<compile_context>
chip_gen: v7x
topology: tpu7x:2x2x1
jax: 0.10.0
libtpu: 0.0.40
codegen_flags: <defaults>
</compile_context>

<pallas_src>
import math
import functools

import jax
import jax.numpy as jnp
import numpy as np
from jax import lax
from jax.experimental import pallas as pl
from jax.experimental.pallas import tpu as pltpu


def _gelu_exact(x):
    # torch.nn.GELU() default is the exact erf formulation.
    return 0.5 * x * (1.0 + lax.erf(x * (1.0 / math.sqrt(2.0))))


def _round_up(v, m):
    return ((v + m - 1) // m) * m


def _adapter_kernel(x_ref, wd_ref, bd_ref, wu_ref, bu_ref, o_ref):
    """One grid step = one batch tile.
       x_ref:  [tm, E]    bf16
       wd_ref: [E, H]     bf16
       bd_ref: [1, H]     f32
       wu_ref: [H, L*U]   bf16   (all layers' up-proj weights, fused)
       bu_ref: [1, L*U]   f32
       o_ref:  [tm, L*U]  f32    (lane-dense output slab)"""
    h = jnp.dot(x_ref[...], wd_ref[...], preferred_element_type=jnp.float32)
    h = _gelu_exact(h + bd_ref[...])
    u = jnp.dot(h.astype(wu_ref.dtype), wu_ref[...],
                preferred_element_type=jnp.float32)
    o_ref[...] = _gelu_exact(u + bu_ref[...])


def context_prompt_adapter_pallas(inputs, wd_t, bd, wu_t, bu,
                                  *, num_prompt_tokens, num_heads, d_kv, num_keys,
                                  block_b=128):
    """inputs: [B, E] f32
       wd_t:   [E, H] f32        (down_proj weight, pre-transposed)
       bd:     [1, H] f32
       wu_t:   [L, H, U] f32     (stacked up_proj weights, pre-transposed)
       bu:     [L, 1, U] f32
    Returns list (len L) of tuples (len num_keys) of [B, num_heads, P, d_kv]."""
    B, E = inputs.shape
    H = wd_t.shape[1]
    L, _, U = wu_t.shape
    LU = L * U

    # Fuse all per-layer up-projections into one wide [H, L*U] matrix.
    wu_all = jnp.transpose(wu_t, (1, 0, 2)).reshape(H, LU)
    bu_all = bu.reshape(1, LU)

    # Batch tiling: pad B up to a sublane multiple (8); tile with block_b rows
    # per grid step for large batches (grid axis is 'parallel' -> v7x megacore).
    tm = min(block_b, _round_up(B, 8))
    Bp = _round_up(B, tm)
    x_pad = jnp.zeros((Bp, E), jnp.float32).at[:B].set(inputs)

    # bf16 operands for the MXU; accumulation stays f32 inside the kernel.
    x_bf = x_pad.astype(jnp.bfloat16)
    wd_bf = wd_t.astype(jnp.bfloat16)
    wu_bf = wu_all.astype(jnp.bfloat16)

    out = pl.pallas_call(
        _adapter_kernel,
        out_shape=jax.ShapeDtypeStruct((Bp, LU), jnp.float32),
        grid_spec=pltpu.PrefetchScalarGridSpec(
            num_scalar_prefetch=0,
            grid=(Bp // tm,),
            in_specs=[
                pl.BlockSpec((tm, E), lambda i: (i, 0)),
                pl.BlockSpec((E, H), lambda i: (0, 0)),
                pl.BlockSpec((1, H), lambda i: (0, 0)),
                pl.BlockSpec((H, LU), lambda i: (0, 0)),
                pl.BlockSpec((1, LU), lambda i: (0, 0)),
            ],
            out_specs=pl.BlockSpec((tm, LU), lambda i: (i, 0)),
        ),
        compiler_params=pltpu.CompilerParams(
            dimension_semantics=("parallel",)),
    )(x_bf, wd_bf, bd, wu_bf, bu_all)

    out = out[:B]  # drop batch padding

    # Layout glue identical to the PyTorch view/permute/split (kept in XLA so
    # the kernel's output store stays lane-dense).
    all_layers = []
    for l in range(L):
        o = out[:, l * U:(l + 1) * U]                                  # [B, U]
        o = o.reshape(B, num_prompt_tokens, num_heads * num_keys, d_kv)
        o = jnp.transpose(o, (0, 2, 1, 3))                             # [B, NH*NK, P, d_kv]
        chunks = tuple(o[:, k * num_heads:(k + 1) * num_heads]         # split(NH, dim=1)
                       for k in range(num_keys))
        all_layers.append(chunks)
    return all_layers


def _reference_f32(inputs, wd_t, bd, wu_t, bu,
                   *, num_prompt_tokens, num_heads, d_kv, num_keys):
    h = _gelu_exact(inputs @ wd_t + bd)
    refs = []
    B = inputs.shape[0]
    for l in range(wu_t.shape[0]):
        u = _gelu_exact(h @ wu_t[l] + bu[l])
        u = u.reshape(B, num_prompt_tokens, num_heads * num_keys, d_kv)
        u = jnp.transpose(u, (0, 2, 1, 3))
        refs.append(tuple(u[:, k * num_heads:(k + 1) * num_heads]
                          for k in range(num_keys)))
    return refs


if __name__ == "__main__":
    # Small config consistent with the module.
    B = 2                     # batch
    E = 32                    # input_embed_size
    H = 16                    # hidden_size (module default)
    P = 4                     # num_prompt_tokens
    NH = 2                    # num_heads
    DKV = 8                   # d_kv
    NK = 4                    # num_keys (module default)
    L = 2                     # num_layers
    U = P * NH * DKV * NK     # up_out_dim = 256

    key = jax.random.PRNGKey(0)
    k_x, k_wd, k_bd, k_wu, k_bu = jax.random.split(key, 5)

    x = jax.random.normal(k_x, (B, E), dtype=jnp.float32)

    # Deterministic "nn.Linear"-style parameters (weight stored [out, in] like
    # PyTorch, then pre-transposed for the kernel). bottleneck_type='large'
    # => independent per-layer up-proj weights.
    wd = jax.random.normal(k_wd, (H, E), dtype=jnp.float32) * (1.0 / math.sqrt(E))
    bd = jax.random.normal(k_bd, (1, H), dtype=jnp.float32) * 0.01
    wu = jax.random.normal(k_wu, (L, U, H), dtype=jnp.float32) * (1.0 / math.sqrt(H))
    bu = jax.random.normal(k_bu, (L, 1, U), dtype=jnp.float32) * 0.01

    wd_t = jnp.transpose(wd, (1, 0))          # [E, H]
    wu_t = jnp.transpose(wu, (0, 2, 1))       # [L, H, U]

    run = functools.partial(context_prompt_adapter_pallas,
                            num_prompt_tokens=P, num_heads=NH, d_kv=DKV, num_keys=NK)
    out = run(x, wd_t, bd, wu_t, bu)
    jax.block_until_ready(out)

    ref = _reference_f32(x, wd_t, bd, wu_t, bu,
                         num_prompt_tokens=P, num_heads=NH, d_kv=DKV, num_keys=NK)
    # Tolerance relaxed vs the pure-f32 reference because the kernel runs its
    # matmul operands in bf16 (f32 accumulation), per the perf review.
    for l in range(L):
        for k in range(NK):
            assert out[l][k].shape == (B, NH, P, DKV)
            np.testing.assert_allclose(np.asarray(out[l][k]),
                                       np.asarray(ref[l][k]),
                                       rtol=5e-2, atol=5e-2)

    print("KERNEL_OK")
</pallas_src>

<mosaic_0001>
module attributes {stable_mosaic.version = 11 : i64} {
  func.func @_adapter_kernel(%arg0: i32, %arg1: memref<8x32xbf16, #tpu.memory_space<vmem>>, %arg2: memref<32x16xbf16, #tpu.memory_space<vmem>>, %arg3: memref<1x16xf32, #tpu.memory_space<vmem>>, %arg4: memref<16x512xbf16, #tpu.memory_space<vmem>>, %arg5: memref<1x512xf32, #tpu.memory_space<vmem>>, %arg6: memref<8x512xf32, #tpu.memory_space<vmem>>) attributes {dimension_semantics = [#tpu.dimension_semantics<parallel>], iteration_bounds = array<i64: 1>, scalar_prefetch = 0 : i64, scratch_operands = 0 : i64, tpu.core_type = #tpu.core_type<tc>, window_params = [{transform_indices = @transform_0, window_bounds = array<i64: 8, 32>}, {pipeline_mode = #tpu.pipeline_mode<synchronous>, transform_indices = @transform_1, window_bounds = array<i64: 32, 16>}, {pipeline_mode = #tpu.pipeline_mode<synchronous>, transform_indices = @transform_2, window_bounds = array<i64: 1, 16>}, {pipeline_mode = #tpu.pipeline_mode<synchronous>, transform_indices = @transform_3, window_bounds = array<i64: 16, 512>}, {pipeline_mode = #tpu.pipeline_mode<synchronous>, transform_indices = @transform_4, window_bounds = array<i64: 1, 512>}, {transform_indices = @transform_5, window_bounds = array<i64: 8, 512>}]} {
    %c0 = arith.constant 0 : index
    %c0_0 = arith.constant 0 : index
    %0 = vector.load %arg1[%c0, %c0_0] : memref<8x32xbf16, #tpu.memory_space<vmem>>, vector<8x32xbf16>
    %c0_1 = arith.constant 0 : index
    %c0_2 = arith.constant 0 : index
    %1 = vector.load %arg2[%c0_1, %c0_2] : memref<32x16xbf16, #tpu.memory_space<vmem>>, vector<32x16xbf16>
    %cst = arith.constant dense<0.000000e+00> : vector<8x16xf32>
    %2 = tpu.matmul %0, %1, %cst {dimension_numbers = #tpu.dot_dimension_numbers<[1], [0], [0], [1], [0, 0, 1, 1], [], []>} : vector<8x32xbf16>, vector<32x16xbf16>, vector<8x16xf32> -> vector<8x16xf32>
    %c0_3 = arith.constant 0 : index
    %c0_4 = arith.constant 0 : index
    %3 = vector.load %arg3[%c0_3, %c0_4] : memref<1x16xf32, #tpu.memory_space<vmem>>, vector<1x16xf32>
    %4 = vector.broadcast %3 : vector<1x16xf32> to vector<8x16xf32>
    %5 = arith.addf %2, %4 : vector<8x16xf32>
    %cst_5 = arith.constant 5.000000e-01 : f32
    %6 = vector.broadcast %cst_5 : f32 to vector<8x16xf32>
    %7 = arith.mulf %6, %5 : vector<8x16xf32>
    %cst_6 = arith.constant 0.707106769 : f32
    %8 = vector.broadcast %cst_6 : f32 to vector<8x16xf32>
    %9 = arith.mulf %5, %8 : vector<8x16xf32>
    %10 = math.erf %9 : vector<8x16xf32>
    %cst_7 = arith.constant 1.000000e+00 : f32
    %11 = vector.broadcast %cst_7 : f32 to vector<8x16xf32>
    %12 = arith.addf %11, %10 : vector<8x16xf32>
    %13 = arith.mulf %7, %12 : vector<8x16xf32>
    %14 = arith.truncf %13 : vector<8x16xf32> to vector<8x16xbf16>
    %c0_8 = arith.constant 0 : index
    %c0_9 = arith.constant 0 : index
    %15 = vector.load %arg4[%c0_8, %c0_9] : memref<16x512xbf16, #tpu.memory_space<vmem>>, vector<16x512xbf16>
    %cst_10 = arith.constant dense<0.000000e+00> : vector<8x512xf32>
    %16 = tpu.matmul %14, %15, %cst_10 {dimension_numbers = #tpu.dot_dimension_numbers<[1], [0], [0], [1], [0, 0, 1, 1], [], []>} : vector<8x16xbf16>, vector<16x512xbf16>, vector<8x512xf32> -> vector<8x512xf32>
    %c0_11 = arith.constant 0 : index
    %c0_12 = arith.constant 0 : index
    %17 = vector.load %arg5[%c0_11, %c0_12] : memref<1x512xf32, #tpu.memory_space<vmem>>, vector<1x512xf32>
    %18 = vector.broadcast %17 : vector<1x512xf32> to vector<8x512xf32>
    %19 = arith.addf %16, %18 : vector<8x512xf32>
    %cst_13 = arith.constant 5.000000e-01 : f32
    %20 = vector.broadcast %cst_13 : f32 to vector<8x512xf32>
    %21 = arith.mulf %20, %19 : vector<8x512xf32>
    %cst_14 = arith.constant 0.707106769 : f32
    %22 = vector.broadcast %cst_14 : f32 to vector<8x512xf32>
    %23 = arith.mulf %19, %22 : vector<8x512xf32>
    %24 = math.erf %23 : vector<8x512xf32>
    %cst_15 = arith.constant 1.000000e+00 : f32
    %25 = vector.broadcast %cst_15 : f32 to vector<8x512xf32>
    %26 = arith.addf %25, %24 : vector<8x512xf32>
    %27 = arith.mulf %21, %26 : vector<8x512xf32>
    %c0_16 = arith.constant 0 : index
    %c0_17 = arith.constant 0 : index
    %28 = vector.load %arg6[%c0_16, %c0_17] : memref<8x512xf32, #tpu.memory_space<vmem>>, vector<8x512xf32>
    tpu.vector_store %arg6[%c0_16, %c0_17], %27 {strides = array<i32>} : memref<8x512xf32, #tpu.memory_space<vmem>>, vector<8x512xf32>,
    return
  }
  func.func @transform_0(%arg0: i32) -> (i32, i32) {
    %c0_i32 = arith.constant 0 : i32
    %c0_i32_0 = arith.constant 0 : i32
    return %arg0, %c0_i32 : i32, i32
  }
  func.func @transform_1(%arg0: i32) -> (i32, i32) {
    %c0_i32 = arith.constant 0 : i32
    %c0_i32_0 = arith.constant 0 : i32
    %c0_i32_1 = arith.constant 0 : i32
    return %c0_i32, %c0_i32_0 : i32, i32
  }
  func.func @transform_2(%arg0: i32) -> (i32, i32) {
    %c0_i32 = arith.constant 0 : i32
    %c0_i32_0 = arith.constant 0 : i32
    %c0_i32_1 = arith.constant 0 : i32
    return %c0_i32, %c0_i32_0 : i32, i32
  }
  func.func @transform_3(%arg0: i32) -> (i32, i32) {
    %c0_i32 = arith.constant 0 : i32
    %c0_i32_0 = arith.constant 0 : i32
    %c0_i32_1 = arith.constant 0 : i32
    return %c0_i32, %c0_i32_0 : i32, i32
  }
  func.func @transform_4(%arg0: i32) -> (i32, i32) {
    %c0_i32 = arith.constant 0 : i32
    %c0_i32_0 = arith.constant 0 : i32
    %c0_i32_1 = arith.constant 0 : i32
    return %c0_i32, %c0_i32_0 : i32, i32
  }
  func.func @transform_5(%arg0: i32) -> (i32, i32) {
    %c0_i32 = arith.constant 0 : i32
    %c0_i32_0 = arith.constant 0 : i32
    return %arg0, %c0_i32 : i32, i32
  }
}

</mosaic_0001>

<bundles_post_ra>
// kernel: tpu_custom_call.1
= control target key start
LH: loop header
LB: loop body
LE: loop exit
PB: predicated region body
PF: predicated region fallthrough
CT: control target
= control target key end

     0   :  { %10 = vsyncpa [#allocation3], 0  ;;  %s454_s0 = inlined_call_operand.hbm [shape: bf16[8,32], index: 0, kind: input, shape index: {}]   ;;  %s455_s1 = inlined_call_operand.vmem [shape: bf16[32,16], index: 1, kind: input, shape index: {}]   ;;  %s456_s2 = inlined_call_operand.vmem [shape: f32[1,16], index: 2, kind: input, shape index: {}]   ;;  %s457_s3 = inlined_call_operand.vmem [shape: bf16[16,512], index: 3, kind: input, shape index: {}]   ;;  %s458_s4 = inlined_call_operand.vmem [shape: f32[1,512], index: 4, kind: input, shape index: {}]   ;;  %s459_s5 = inlined_call_operand.hbm [shape: f32[8,512], index: 5, kind: output, shape index: {}]  }
   0x1   :  { %11 = vsyncpa [#allocation4], 0  ;;  %s371_s18 = smov [#allocation2]   ;;  %s323_s22 = scalar_lea.hbm %s454_s0, 64 }
   0x2   :  { %s18_s19 = sshll.u32 %s371_s18, 4  ;;  %p324_p0 = scmp.ne.s32.totalorder %s454_s0, %s323_s22  ;;  %s19_s19 = int_to_ptr.vmem [resolvable:$true] %s18_s19 }
   0x3   :  { %p327_p1 = scmp.lt.u32.totalorder %s323_s22, %s454_s0 }
   0x5   :  { %p329_p2 = pnand %p327_p1, %p324_p0 }
   0x7   :  { %332 = shalt.err (!%p329_p2)
}
   0x8   :  { %s333_s27 = scalar_lea.vmem %s19_s19, 64  ;;  %p338_p4 = scmp.lt.s32.totalorder %s19_s19, %s19_s19 }
   0x9   :  { %p334_p3 = scmp.ne.s32.totalorder %s19_s19, %s333_s27  ;;  %p339_p5 = scmp.lt.s32.totalorder %s333_s27, %s333_s27 }
   0xb   :  { %p340_p6 = por %p339_p5, %p338_p4 }
   0xd   :  { %p341_p7 = pnand %p340_p6, %p334_p3 }
   0xf   :  { %344 = shalt.err (!%p341_p7)
}
  0x10   :  { %21 = dma.hbm_to_vmem [thread:$0]  %s454_s0, 64, %s19_s19, [#allocation3]  }
  0x11   :  { %367 = dma.done.wait [#allocation3], 64  }
  0x12   :  { %368 = vsyncadd [#allocation3], 4294967232  ;;  %v372_v0 = vmov 0.0   ;;  %vm373_vm0 = vmmov 0   ;;  %v305_v1 = vld [vmem:[%s455_s1] sm:$0xff]   ;;  %v306_v2 = vld [vmem:[%s455_s1 + $0x8] sm:$0xff]   ;;  %v114_v21 = vlaneseq }
  0x13   :  { %292 = vmatprep.subr.bf16.mxu0 %v372_v0  ;;  %296 = vmatprep.mubr.msk.bf16.mxu0 %vm373_vm0, %v372_v0  ;;  %v34_v3 = vld [vmem:[#allocation2] sm:$0xf]  ;;  %vm58_vm1 = vcmask 261120   ;;  %v307_v4 = vld [vmem:[%s457_s3 + $0x4] ss:$16 sps:$4 sm:$0xff]   ;;  %v374_v7 = vmov 0  }
  0x14   :  { %293 = vmatpush3.bf16.msra.mxu0 %v305_v1  ;;  %v309_v5 = vld [vmem:[%s457_s3] ss:$16 sps:$4 sm:$0xff]   ;;  %158 = vmatprep.subr.bf16.mxu1 %v307_v4  ;;  %v312_v6 = vld [vmem:[%s457_s3 + $0xc] ss:$16 sps:$4 sm:$0xff]   ;;  %v310_v19 = vld [vmem:[%s457_s3 + $0x8] ss:$16 sps:$4 sm:$0xff]  }
  0x15   :  { %294 = vmatprep.subr.bf16.mxu0 %v372_v0  ;;  %159 = vmatpush1.bf16.msra.mxu1 %v309_v5  ;;  %v279_v8 = vld [vmem:[%s456_s2] ss:$0 sm:$0xff]  ;;  %vm154_vm2 = vcmask 130048   ;;  %v115_v22 = vshrl.u32 %v114_v21, 7  ;;  %s375_s3 = smov [#allocation5]  }
  0x16   :  { %190 = vmatprep.mubr.bf16.mxu1 %v374_v7  ;;  %199 = vmatprep.subr.bf16.mxu1 %v312_v6  ;;  %v112_v24 = vld [vmem:[%s458_s4] sm:$0xf]  ;;  %s270_s4 = sshll.u32 %s375_s3, 4  ;;  %s271_s4 = int_to_ptr.vmem [resolvable:$true] %s270_s4 }
  0x17   :  { %v116_v23 = vsub.s32 0, %v115_v22  ;;  %v120_v25 = vsub.s32 1, %v115_v22  ;;  %v124_v31 = vsub.s32 2, %v115_v22  ;;  %v128_v34 = vsub.s32 3, %v115_v22  ;;  %s345_s18 = scalar_lea.vmem %s271_s4, 512  ;;  %p350_p9 = scmp.lt.s32.totalorder %s271_s4, %s271_s4 }
  0x18   :  { %295 = vmatpush3.bf16.msra.mxu0 %v306_v2  ;;  %p346_p8 = scmp.ne.s32.totalorder %s271_s4, %s345_s18  ;;  %p351_p10 = scmp.lt.s32.totalorder %s345_s18, %s345_s18 }
  0x19   :  { %v117_v26 = vrot.slane %v112_v24, %v116_v23  ;;  %v121_v27 = vrot.slane %v112_v24, %v120_v25  ;;  %v125_v38 = vrot.slane %v112_v24, %v124_v31  ;;  %v129_v39 = vrot.slane %v112_v24, %v128_v34 }
  0x1a   :  { %p352_p11 = por %p351_p10, %p350_p9 }
  0x1b   :  { %297 = vmatmul.mubr.msk.bf16.vlgmr.msra.gmra.mrb[0].mxu0 %vm58_vm1, %v34_v3 }
  0x1c   :  { %p353_p12 = pnand %p352_p11, %p346_p8 }
  0xee   :  { %v96_v9 = vpop.f32.mrb[0].mxu0 }
  0xef   :  { %v97_v10 = vadd.f32 %v279_v8, %v96_v9  ;;  %v298_v11 = vpop.f32.mrb[1].mxu0 }
  0xf0   :  { %v99_v12 = vpop.f32.mrb[2].mxu0 }
  0xf1   :  { %v103_v13 = vmul.f32 0.70710677, %v97_v10  ;;  %v299_v14 = vpop.f32.mrb[3].mxu0  ;;  %v102_v16 = vmul.f32 0.5, %v97_v10 }
  0xf3   :  { %313 = verf.f32 %v103_v13 }
  0xfd   :  { %v314_v15 = vpop.eup %313 }
  0xfe   :  { %v105_v17 = vadd.f32 1.0, %v314_v15 }
 0x100   :  { %v106_v18 = vmul.f32 %v105_v17, %v102_v16 }
 0x102   :  { %v107_v20 = vpack.c.bf16 %v106_v18, %v106_v18 }
 0x104   :  { %287 = vmatmul.mubr.msk.bf16.vlgmr.msra.gmra.mrb[0].mxu1 %vm154_vm2, %v107_v20 }
 0x105   :  { %200 = vmatpush1.bf16.msra.mxu1 %v310_v19  ;;  %231 = vmatprep.mubr.bf16.mxu1 %v374_v7 }
 0x10c   :  { %288 = vmatmul.mubr.msk.bf16.vlgmr.msra.gmra.mrb[4].mxu1 %vm154_vm2, %v107_v20 }
 0x1d7   :  { %v192_v28 = vpop.f32.mrb[0].mxu1 }
 0x1d8   :  { %v193_v29 = vadd.f32 %v192_v28, %v117_v26  ;;  %v194_v30 = vpop.f32.mrb[1].mxu1 }
 0x1d9   :  { %v195_v32 = vadd.f32 %v194_v30, %v121_v27  ;;  %v196_v33 = vpop.f32.mrb[2].mxu1 }
 0x1da   :  { %v244_v35 = vmul.f32 0.70710677, %v193_v29  ;;  %v197_v36 = vpop.f32.mrb[3].mxu1  ;;  %v240_v50 = vmul.f32 0.5, %v193_v29 }
 0x1db   :  { %v245_v37 = vmul.f32 0.70710677, %v195_v32  ;;  %v241_v52 = vmul.f32 0.5, %v195_v32 }
 0x1dc   :  { %315 = verf.f32 %v244_v35 }
 0x1dd   :  { %317 = verf.f32 %v245_v37 }
 0x1df   :  { %v233_v40 = vpop.f32.mrb[4].mxu1 }
 0x1e0   :  { %v234_v41 = vadd.f32 %v233_v40, %v125_v38  ;;  %v235_v42 = vpop.f32.mrb[5].mxu1 }
 0x1e1   :  { %v236_v43 = vadd.f32 %v235_v42, %v129_v39  ;;  %v237_v44 = vpop.f32.mrb[6].mxu1 }
 0x1e2   :  { %v246_v45 = vmul.f32 0.70710677, %v234_v41  ;;  %v238_v46 = vpop.f32.mrb[7].mxu1  ;;  %v242_v58 = vmul.f32 0.5, %v234_v41 }
 0x1e3   :  { %v247_v47 = vmul.f32 0.70710677, %v236_v43  ;;  %v243_v60 = vmul.f32 0.5, %v236_v43 }
 0x1e4   :  { %319 = verf.f32 %v246_v45 }
 0x1e5   :  { %321 = verf.f32 %v247_v47 }
 0x1e6   :  { %v316_v48 = vpop.eup %315 }
 0x1e7   :  { %v318_v49 = vpop.eup %317  ;;  %v252_v51 = vadd.f32 1.0, %v316_v48 }
 0x1e8   :  { %v253_v53 = vadd.f32 1.0, %v318_v49 }
 0x1e9   :  { %v256_v54 = vmul.f32 %v252_v51, %v240_v50 }
 0x1ea   :  { %v257_v55 = vmul.f32 %v253_v53, %v241_v52 }
 0x1eb   :  { %260 = vst [vmem:[#allocation5] sm:$0xff] %v256_v54 }
 0x1ec   :  { %261 = vst [vmem:[#allocation5 + $0x8] sm:$0xff] %v257_v55 }
 0x1ee   :  { %v320_v56 = vpop.eup %319 }
 0x1ef   :  { %v322_v57 = vpop.eup %321  ;;  %v254_v59 = vadd.f32 1.0, %v320_v56 }
 0x1f0   :  { %v255_v61 = vadd.f32 1.0, %v322_v57 }
 0x1f1   :  { %v258_v62 = vmul.f32 %v254_v59, %v242_v58 }
 0x1f2   :  { %v259_v63 = vmul.f32 %v255_v61, %v243_v60 }
 0x1f3   :  { %262 = vst [vmem:[#allocation5 + $0x10] sm:$0xff] %v258_v62 }
 0x1f4   :  { %263 = vst [vmem:[#allocation5 + $0x18] sm:$0xff] %v259_v63 }
 0x1f5   :  { %356 = shalt.err (!%p353_p12)
}
 0x1f6   :  { %s357_s21 = scalar_lea.hbm %s459_s5, 512 }
 0x1f7   :  { %p358_p13 = scmp.ne.s32.totalorder %s459_s5, %s357_s21  ;;  %p361_p0 = scmp.lt.u32.totalorder %s357_s21, %s459_s5 }
 0x1f9   :  { %p363_p1 = pnand %p361_p0, %p358_p13 }
 0x1fb   :  { %366 = shalt.err (!%p363_p1)
}
 0x1fc   :  { %273 = dma.vmem_to_hbm [thread:$0]  %s271_s4, 512, %s459_s5, [#allocation4]  }
 0x1fd   :  { %369 = dma.done.wait [#allocation4], 512  }
 0x1fe   :  { %370 = vsyncadd [#allocation4], 4294966784 }
 0x1ff   :  { %277 = vsyncpa [#allocation3], 1 }
 0x200   :  { %278 = vsyncpa [#allocation4], 1 }

</bundles_post_ra>
